<compile_context>
chip_gen: v7x
topology: tpu7x:2x2x1
jax: 0.10.0
libtpu: 0.0.40
codegen_flags: <defaults>
</compile_context>

<pallas_src>
import jax
import jax.numpy as jnp
from jax.experimental import pallas as pl
from jax.experimental.pallas import tpu as pltpu


def _round_up(x, m):
    return ((x + m - 1) // m) * m


# ----------------------------------------------------------------------------
# Kernel: logits = tanh(x_pad @ W1_pad) @ W2_pad ; act = argmax(logits[:, :A])
# Biases are pre-folded into the padded weights:
#   x_pad[:, obs_dim] == 1.0 and W1_pad[obs_dim, :hidden] == b1
#   hidden lane `hidden` is forced to 1.0 and W2_pad[hidden, :n_actions] == b2
# ----------------------------------------------------------------------------
def _make_policy_kernel(hidden, n_actions):
    def kernel(x_ref, w1_ref, w2_ref, logits_ref, act_ref):
        # (TB, OBS_PAD)bf16 @ (OBS_PAD, HID_PAD)bf16 -> f32 (MXU, f32 accumulate).
        h = jnp.dot(x_ref[...], w1_ref[...], preferred_element_type=jnp.float32)
        h = jnp.tanh(h)  # EUP
        # Force the b2 carrier lane to exactly 1.0 (other padding lanes stay
        # tanh(0) == 0, so they contribute nothing).
        hid_lane = jax.lax.broadcasted_iota(jnp.int32, h.shape, 1)
        h = jnp.where(hid_lane == hidden, 1.0, h)
        # Second matmul, bf16 operands, f32 accumulate.
        o = jnp.dot(h.astype(w2_ref.dtype), w2_ref[...],
                    preferred_element_type=jnp.float32)
        logits_ref[...] = o  # lane-dense (TB, ACT_PAD) unmasked store
        # Fused argmax over the valid action lanes (first-max tie-break, same
        # as jnp.argmax), built from max/min/where lane reductions.
        act_lane = jax.lax.broadcasted_iota(jnp.int32, o.shape, 1)
        masked = jnp.where(act_lane < n_actions, o, -jnp.inf)
        best = jnp.max(masked, axis=-1, keepdims=True)
        idx = jnp.where(masked == best, act_lane, o.shape[-1])
        act_ref[...] = jnp.min(idx, axis=-1, keepdims=True).astype(jnp.int32)

    return kernel


def policy_forward_padded(x_pad, w1_pad, w2_pad, *, hidden, n_actions, tb):
    """Batch-tiled Pallas launch; weights are VMEM-resident across grid steps."""
    batch_pad, obs_pad = x_pad.shape
    hid_pad = w1_pad.shape[1]
    act_pad = w2_pad.shape[1]
    kernel = _make_policy_kernel(hidden, n_actions)
    return pl.pallas_call(
        kernel,
        out_shape=(
            jax.ShapeDtypeStruct((batch_pad, act_pad), jnp.float32),
            jax.ShapeDtypeStruct((batch_pad, 1), jnp.int32),
        ),
        grid=(batch_pad // tb,),
        in_specs=[
            pl.BlockSpec((tb, obs_pad), lambda i: (i, 0)),       # activation stream
            pl.BlockSpec((obs_pad, hid_pad), lambda i: (0, 0)),  # resident weights
            pl.BlockSpec((hid_pad, act_pad), lambda i: (0, 0)),  # resident weights
        ],
        out_specs=(
            pl.BlockSpec((tb, act_pad), lambda i: (i, 0)),       # lane-dense logits
            pl.BlockSpec((tb, 1), lambda i: (i, 0)),             # fused argmax
        ),
        compiler_params=pltpu.CompilerParams(
            dimension_semantics=("parallel",),  # v7x: shard batch across 2 TCs
        ),
    )(x_pad, w1_pad, w2_pad)


# ----------------------------------------------------------------------------
# Module mirrors
# ----------------------------------------------------------------------------
class PolicyPallasBase:
    """JAX/Pallas mirror of PolicyTorchBase (abstract, same semantics)."""

    def __init__(self, env=None):
        self.env = env

    def on_state(self, state):
        return self(state)

    def __call__(self, x):
        return self.forward(x)

    def forward(self, x):
        raise Exception("Must be overriden")

    def act(self, state):
        raise Exception("Must be overriden")


class MLPPolicyPallas(PolicyPallasBase):
    """Concrete subclass; MLP head + argmax run in a single Pallas kernel."""

    def __init__(self, env=None, obs_dim=32, hidden=32, n_actions=8, key=None):
        super().__init__(env)
        self.obs_dim, self.hidden, self.n_actions = obs_dim, hidden, n_actions
        key = jax.random.PRNGKey(0) if key is None else key
        k1, k2 = jax.random.split(key)

        # f32 master parameters (reference / source of the padded bf16 weights).
        self.w1 = jax.random.normal(k1, (obs_dim, hidden), jnp.float32) * 0.1
        self.b1 = jnp.zeros((hidden,), jnp.float32)
        self.w2 = jax.random.normal(k2, (hidden, n_actions), jnp.float32) * 0.1
        self.b2 = jnp.zeros((n_actions,), jnp.float32)

        # Lane-dense padded shapes (+1 rows for the folded biases).
        self.obs_pad = _round_up(obs_dim + 1, 128)
        self.hid_pad = _round_up(hidden + 1, 128)
        self.act_pad = _round_up(n_actions, 128)

        w1_pad = jnp.zeros((self.obs_pad, self.hid_pad), jnp.float32)
        w1_pad = w1_pad.at[:obs_dim, :hidden].set(self.w1)
        w1_pad = w1_pad.at[obs_dim, :hidden].set(self.b1)      # folded b1 row
        w2_pad = jnp.zeros((self.hid_pad, self.act_pad), jnp.float32)
        w2_pad = w2_pad.at[:hidden, :n_actions].set(self.w2)
        w2_pad = w2_pad.at[hidden, :n_actions].set(self.b2)    # folded b2 row

        # Store weights in bf16 once, so no cast sits in the hot path.
        self.w1_pad = w1_pad.astype(jnp.bfloat16)
        self.w2_pad = w2_pad.astype(jnp.bfloat16)

    def _run(self, x):
        batch = x.shape[0]
        tb = 256 if batch >= 256 else _round_up(batch, 8)
        batch_pad = _round_up(batch, tb)
        x_pad = jnp.zeros((batch_pad, self.obs_pad), jnp.bfloat16)
        x_pad = x_pad.at[:batch, : self.obs_dim].set(x.astype(jnp.bfloat16))
        x_pad = x_pad.at[:, self.obs_dim].set(1.0)              # b1 ones column
        logits_pad, act_out = policy_forward_padded(
            x_pad, self.w1_pad, self.w2_pad,
            hidden=self.hidden, n_actions=self.n_actions, tb=tb)
        return logits_pad[:batch, : self.n_actions], act_out[:batch, 0]

    def forward(self, x):
        logits, _ = self._run(x)
        return logits

    def act(self, state):
        _, actions = self._run(state)
        return actions


if __name__ == "__main__":
    batch, obs_dim, hidden, n_actions = 8, 32, 32, 8

    policy = MLPPolicyPallas(env=None, obs_dim=obs_dim, hidden=hidden,
                             n_actions=n_actions, key=jax.random.PRNGKey(0))
    state = jax.random.normal(jax.random.PRNGKey(1), (batch, obs_dim), jnp.float32)

    logits = jax.block_until_ready(policy.on_state(state))
    actions = jax.block_until_ready(policy.act(state))

    # Pure-JAX reference mimicking kernel precision (bf16 operands, f32 accum).
    bf = lambda a: a.astype(jnp.bfloat16).astype(jnp.float32)
    h_ref = jnp.tanh(bf(state) @ bf(policy.w1) + policy.b1)
    ref = bf(h_ref) @ bf(policy.w2) + policy.b2

    assert logits.shape == (batch, n_actions)
    assert jnp.allclose(logits, ref, atol=2e-3, rtol=2e-3), "logits mismatch vs reference"
    assert actions.shape == (batch,)
    assert jnp.array_equal(actions, jnp.argmax(logits, axis=-1)), "fused argmax mismatch"

    print("KERNEL_OK")
</pallas_src>

<mosaic_0001>
module attributes {stable_mosaic.version = 11 : i64} {
  func.func @kernel(%arg0: i32, %arg1: memref<8x128xbf16, #tpu.memory_space<vmem>>, %arg2: memref<128x128xbf16, #tpu.memory_space<vmem>>, %arg3: memref<128x128xbf16, #tpu.memory_space<vmem>>, %arg4: memref<8x128xf32, #tpu.memory_space<vmem>>, %arg5: memref<8x1xi32, #tpu.memory_space<vmem>>) attributes {dimension_semantics = [#tpu.dimension_semantics<parallel>], iteration_bounds = array<i64: 1>, scalar_prefetch = 0 : i64, scratch_operands = 0 : i64, tpu.core_type = #tpu.core_type<tc>, window_params = [{transform_indices = @transform_0, window_bounds = array<i64: 8, 128>}, {pipeline_mode = #tpu.pipeline_mode<synchronous>, transform_indices = @transform_1, window_bounds = array<i64: 128, 128>}, {pipeline_mode = #tpu.pipeline_mode<synchronous>, transform_indices = @transform_2, window_bounds = array<i64: 128, 128>}, {transform_indices = @transform_3, window_bounds = array<i64: 8, 128>}, {transform_indices = @transform_4, window_bounds = array<i64: 8, 1>}]} {
    %c0 = arith.constant 0 : index
    %c0_0 = arith.constant 0 : index
    %0 = vector.load %arg1[%c0, %c0_0] : memref<8x128xbf16, #tpu.memory_space<vmem>>, vector<8x128xbf16>
    %c0_1 = arith.constant 0 : index
    %c0_2 = arith.constant 0 : index
    %1 = vector.load %arg2[%c0_1, %c0_2] : memref<128x128xbf16, #tpu.memory_space<vmem>>, vector<128x128xbf16>
    %cst = arith.constant dense<0.000000e+00> : vector<8x128xf32>
    %2 = tpu.matmul %0, %1, %cst {dimension_numbers = #tpu.dot_dimension_numbers<[1], [0], [0], [1], [0, 0, 1, 1], [], []>} : vector<8x128xbf16>, vector<128x128xbf16>, vector<8x128xf32> -> vector<8x128xf32>
    %3 = math.tanh %2 : vector<8x128xf32>
    %4 = tpu.iota {dimensions = array<i32: 1>} : vector<8x128xi32>
    %c32_i32 = arith.constant 32 : i32
    %5 = vector.broadcast %c32_i32 : i32 to vector<8x128xi32>
    %6 = arith.cmpi eq, %4, %5 : vector<8x128xi32>
    %cst_3 = arith.constant 1.000000e+00 : f32
    %7 = vector.broadcast %cst_3 : f32 to vector<8x128xf32>
    %8 = arith.select %6, %7, %3 : vector<8x128xi1>, vector<8x128xf32>
    %9 = arith.truncf %8 : vector<8x128xf32> to vector<8x128xbf16>
    %c0_4 = arith.constant 0 : index
    %c0_5 = arith.constant 0 : index
    %10 = vector.load %arg3[%c0_4, %c0_5] : memref<128x128xbf16, #tpu.memory_space<vmem>>, vector<128x128xbf16>
    %cst_6 = arith.constant dense<0.000000e+00> : vector<8x128xf32>
    %11 = tpu.matmul %9, %10, %cst_6 {dimension_numbers = #tpu.dot_dimension_numbers<[1], [0], [0], [1], [0, 0, 1, 1], [], []>} : vector<8x128xbf16>, vector<128x128xbf16>, vector<8x128xf32> -> vector<8x128xf32>
    %c0_7 = arith.constant 0 : index
    %c0_8 = arith.constant 0 : index
    %12 = vector.load %arg4[%c0_7, %c0_8] : memref<8x128xf32, #tpu.memory_space<vmem>>, vector<8x128xf32>
    tpu.vector_store %arg4[%c0_7, %c0_8], %11 {strides = array<i32>} : memref<8x128xf32, #tpu.memory_space<vmem>>, vector<8x128xf32>,
    %13 = tpu.iota {dimensions = array<i32: 1>} : vector<8x128xi32>
    %c8_i32 = arith.constant 8 : i32
    %14 = vector.broadcast %c8_i32 : i32 to vector<8x128xi32>
    %15 = arith.cmpi slt, %13, %14 : vector<8x128xi32>
    %cst_9 = arith.constant 0xFF800000 : f32
    %16 = vector.broadcast %cst_9 : f32 to vector<8x128xf32>
    %17 = arith.select %15, %11, %16 : vector<8x128xi1>, vector<8x128xf32>
    %cst_10 = arith.constant dense<0xFF800000> : vector<8xf32>
    %18 = vector.multi_reduction <maximumf>, %17, %cst_10 [1] : vector<8x128xf32> to vector<8xf32>
    %19 = vector.shape_cast %18 : vector<8xf32> to vector<8x1xf32>
    %20 = vector.broadcast %19 : vector<8x1xf32> to vector<8x128xf32>
    %21 = arith.cmpf oeq, %17, %20 : vector<8x128xf32>
    %c128_i32 = arith.constant 128 : i32
    %22 = vector.broadcast %c128_i32 : i32 to vector<8x128xi32>
    %23 = arith.select %21, %13, %22 : vector<8x128xi1>, vector<8x128xi32>
    %cst_11 = arith.constant dense<2147483647> : vector<8xi32>
    %24 = vector.multi_reduction <minsi>, %23, %cst_11 [1] : vector<8x128xi32> to vector<8xi32>
    %25 = vector.shape_cast %24 : vector<8xi32> to vector<8x1xi32>
    %c0_12 = arith.constant 0 : index
    %c0_13 = arith.constant 0 : index
    %26 = vector.load %arg5[%c0_12, %c0_13] : memref<8x1xi32, #tpu.memory_space<vmem>>, vector<8x1xi32>
    tpu.vector_store %arg5[%c0_12, %c0_13], %25 {strides = array<i32>} : memref<8x1xi32, #tpu.memory_space<vmem>>, vector<8x1xi32>,
    return
  }
  func.func @transform_0(%arg0: i32) -> (i32, i32) {
    %c0_i32 = arith.constant 0 : i32
    %c0_i32_0 = arith.constant 0 : i32
    return %arg0, %c0_i32 : i32, i32
  }
  func.func @transform_1(%arg0: i32) -> (i32, i32) {
    %c0_i32 = arith.constant 0 : i32
    %c0_i32_0 = arith.constant 0 : i32
    %c0_i32_1 = arith.constant 0 : i32
    return %c0_i32, %c0_i32_0 : i32, i32
  }
  func.func @transform_2(%arg0: i32) -> (i32, i32) {
    %c0_i32 = arith.constant 0 : i32
    %c0_i32_0 = arith.constant 0 : i32
    %c0_i32_1 = arith.constant 0 : i32
    return %c0_i32, %c0_i32_0 : i32, i32
  }
  func.func @transform_3(%arg0: i32) -> (i32, i32) {
    %c0_i32 = arith.constant 0 : i32
    %c0_i32_0 = arith.constant 0 : i32
    return %arg0, %c0_i32 : i32, i32
  }
  func.func @transform_4(%arg0: i32) -> (i32, i32) {
    %c0_i32 = arith.constant 0 : i32
    %c0_i32_0 = arith.constant 0 : i32
    return %arg0, %c0_i32 : i32, i32
  }
}

</mosaic_0001>

<bundles_post_ra>
// kernel: tpu_custom_call.1
= control target key start
LH: loop header
LB: loop body
LE: loop exit
PB: predicated region body
PF: predicated region fallthrough
CT: control target
= control target key end

     0   :  { %10 = vsyncpa [#allocation3], 0  ;;  %s599_s0 = inlined_call_operand.hbm [shape: bf16[8,128], index: 0, kind: input, shape index: {}]   ;;  %s600_s1 = inlined_call_operand.hbm [shape: bf16[128,128], index: 1, kind: input, shape index: {}]   ;;  %s601_s2 = inlined_call_operand.hbm [shape: bf16[128,128], index: 2, kind: input, shape index: {}]   ;;  %s602_s3 = inlined_call_operand.hbm [shape: f32[8,128], index: 3, kind: output, shape index: {0}]   ;;  %s603_s4 = inlined_call_operand.vmem [shape: s32[8,1], index: 4, kind: output, shape index: {1}]  }
   0x1   :  { %11 = vsyncpa [#allocation6], 0 }
   0x2   :  { %12 = vsyncpa [#allocation4], 0  ;;  %s509_s15 = smov [#allocation5]   ;;  %s415_s19 = scalar_lea.hbm %s600_s1, 1024 }
   0x3   :  { %s28_s16 = sshll.u32 %s509_s15, 4  ;;  %p416_p0 = scmp.ne.s32.totalorder %s600_s1, %s415_s19  ;;  %s29_s16 = int_to_ptr.vmem [resolvable:$true] %s28_s16 }
   0x4   :  { %p419_p1 = scmp.lt.u32.totalorder %s415_s19, %s600_s1 }
   0x6   :  { %p421_p2 = pnand %p419_p1, %p416_p0 }
   0x8   :  { %424 = shalt.err (!%p421_p2)
}
   0x9   :  { %s425_s24 = scalar_lea.vmem %s29_s16, 1024  ;;  %p430_p4 = scmp.lt.s32.totalorder %s29_s16, %s29_s16 }
   0xa   :  { %p426_p3 = scmp.ne.s32.totalorder %s29_s16, %s425_s24  ;;  %p431_p5 = scmp.lt.s32.totalorder %s425_s24, %s425_s24 }
   0xc   :  { %p432_p6 = por %p431_p5, %p430_p4 }
   0xe   :  { %p433_p7 = pnand %p432_p6, %p426_p3 }
  0x10   :  { %436 = shalt.err (!%p433_p7)
}
  0x11   :  { %s510_s25 = smov 64   ;;  %s511_s26 = smov 4  }
  0x12   :  { %34 = dma.hbm_to_vmem [thread:$0]  %s600_s1, 1024, %s29_s16, [#allocation6], %s510_s25, %s510_s25, %s511_s26  }
  0x13   :  { %s512_s29 = smov [#allocation2]   ;;  %s513_s5 = smov [#allocation7]  }
  0x14   :  { %s19_s30 = sshll.u32 %s512_s29, 4  ;;  %s40_s6 = sshll.u32 %s513_s5, 4  ;;  %s20_s30 = int_to_ptr.vmem [resolvable:$true] %s19_s30  ;;  %s41_s6 = int_to_ptr.vmem [resolvable:$true] %s40_s6 }
  0x15   :  { %s437_s9 = scalar_lea.hbm %s599_s0, 64 }
  0x16   :  { %p438_p8 = scmp.ne.s32.totalorder %s599_s0, %s437_s9  ;;  %p441_p9 = scmp.lt.u32.totalorder %s437_s9, %s599_s0 }
  0x18   :  { %p443_p10 = pnand %p441_p9, %p438_p8 }
  0x1a   :  { %446 = shalt.err (!%p443_p10)
}
  0x1b   :  { %s447_s1 = scalar_lea.vmem %s20_s30, 64  ;;  %p452_p12 = scmp.lt.s32.totalorder %s20_s30, %s20_s30 }
  0x1c   :  { %p448_p11 = scmp.ne.s32.totalorder %s20_s30, %s447_s1  ;;  %p453_p13 = scmp.lt.s32.totalorder %s447_s1, %s447_s1 }
  0x1e   :  { %p454_p0 = por %p453_p13, %p452_p12 }
  0x20   :  { %p455_p1 = pnand %p454_p0, %p448_p11 }
  0x22   :  { %458 = shalt.err (!%p455_p1)
}
  0x23   :  { %22 = dma.hbm_to_vmem [thread:$0]  %s599_s0, 64, %s20_s30, [#allocation3]  }
  0x24   :  { %s459_s18 = scalar_lea.hbm %s601_s2, 1024 }
  0x25   :  { %p460_p2 = scmp.ne.s32.totalorder %s601_s2, %s459_s18  ;;  %p463_p3 = scmp.lt.u32.totalorder %s459_s18, %s601_s2 }
  0x27   :  { %p465_p4 = pnand %p463_p3, %p460_p2 }
  0x29   :  { %468 = shalt.err (!%p465_p4)
}
  0x2a   :  { %s469_s23 = scalar_lea.vmem %s41_s6, 1024  ;;  %p474_p6 = scmp.lt.s32.totalorder %s41_s6, %s41_s6 }
  0x2b   :  { %p470_p5 = scmp.ne.s32.totalorder %s41_s6, %s469_s23  ;;  %p475_p7 = scmp.lt.s32.totalorder %s469_s23, %s469_s23 }
  0x2d   :  { %p476_p8 = por %p475_p7, %p474_p6 }
  0x2f   :  { %p477_p9 = pnand %p476_p8, %p470_p5 }
  0x31   :  { %480 = shalt.err (!%p477_p9)
}
  0x32   :  { %46 = dma.hbm_to_vmem [thread:$0]  %s601_s2, 1024, %s41_s6, [#allocation6], %s510_s25, %s510_s25, %s511_s26  }
  0x33   :  { %503 = dma.done.wait [#allocation3], 64  }
  0x34   :  { %504 = vsyncadd [#allocation3], 4294967232 }
  0x35   :  { %505 = dma.done.wait [#allocation6], 2048  }
  0x36   :  { %506 = vsyncadd [#allocation6], 4294965248  ;;  %v514_v0 = vmov 0.0   ;;  %vm515_vm0 = vmmov 0   ;;  %v397_v1 = vld [vmem:[#allocation5] sm:$0xff]   ;;  %v398_v2 = vld [vmem:[#allocation5 + $0x8] sm:$0xff]   ;;  %v163_v20 = vlaneseq }
  0x37   :  { %349 = vmatprep.subr.bf16.mxu0 %v514_v0  ;;  %365 = vmatprep.mubr.msk.bf16.mxu0 %vm515_vm0, %v514_v0  ;;  %v399_v3 = vld [vmem:[#allocation5 + $0x10] sm:$0xff]   ;;  %v405_v4 = vld [vmem:[#allocation7] sm:$0xff]   ;;  %v400_v5 = vld [vmem:[#allocation5 + $0x18] sm:$0xff]   ;;  %s516_s2 = smov [#allocation8]  }
  0x38   :  { %369 = vmatprep.subr.bf16.mxu1 %v514_v0  ;;  %385 = vmatprep.mubr.msk.bf16.mxu1 %vm515_vm0, %v514_v0  ;;  %v406_v6 = vld [vmem:[#allocation7 + $0x8] sm:$0xff]   ;;  %v401_v7 = vld [vmem:[#allocation5 + $0x20] sm:$0xff]   ;;  %v407_v8 = vld [vmem:[#allocation7 + $0x10] sm:$0xff]   ;;  %v164_v23 = vand.u32 127, %v163_v20  ;;  %s301_s25 = sshll.u32 %s516_s2, 4  ;;  %s302_s25 = int_to_ptr.vmem [resolvable:$true] %s301_s25 }
  0x39   :  { %350 = vmatpush3.bf16.msra.mxu0 %v397_v1  ;;  %370 = vmatpush3.bf16.msra.mxu1 %v405_v4  ;;  %v402_v9 = vld [vmem:[#allocation5 + $0x28] sm:$0xff]   ;;  %v408_v10 = vld [vmem:[#allocation7 + $0x18] sm:$0xff]   ;;  %v403_v11 = vld [vmem:[#allocation5 + $0x30] sm:$0xff]   ;;  %s481_s26 = scalar_lea.vmem %s302_s25, 128  ;;  %p486_p11 = scmp.lt.s32.totalorder %s302_s25, %s302_s25 }
  0x3a   :  { %351 = vmatprep.subr.bf16.mxu0 %v514_v0  ;;  %371 = vmatprep.subr.bf16.mxu1 %v514_v0  ;;  %v404_v12 = vld [vmem:[#allocation5 + $0x38] sm:$0xff]   ;;  %v409_v14 = vld [vmem:[#allocation7 + $0x20] sm:$0xff]   ;;  %v410_v15 = vld [vmem:[#allocation7 + $0x28] sm:$0xff]   ;;  %vm165_vm1 = vcmp.eq.s32.totalorder %v164_v23, 32  ;;  %vm273_vm2 = vcmp.lt.s32.totalorder %v164_v23, 8  ;;  %p482_p10 = scmp.ne.s32.totalorder %s302_s25, %s481_s26  ;;  %p487_p12 = scmp.lt.s32.totalorder %s481_s26, %s481_s26 }
  0x3b   :  { %v57_v13 = vld [vmem:[#allocation2] sm:$0xf]  ;;  %v411_v16 = vld [vmem:[#allocation7 + $0x30] sm:$0xff]  }
  0x3c   :  { %v412_v17 = vld [vmem:[#allocation7 + $0x38] sm:$0xff]   ;;  %p488_p13 = por %p487_p12, %p486_p11 }
  0x3d   :  { %352 = vmatpush3.bf16.msra.mxu0 %v398_v2  ;;  %372 = vmatpush3.bf16.msra.mxu1 %v406_v6 }
  0x3e   :  { %353 = vmatprep.subr.bf16.mxu0 %v514_v0  ;;  %373 = vmatprep.subr.bf16.mxu1 %v514_v0  ;;  %p489_p0 = pnand %p488_p13, %p482_p10 }
  0x41   :  { %354 = vmatpush3.bf16.msra.mxu0 %v399_v3  ;;  %374 = vmatpush3.bf16.msra.mxu1 %v407_v8 }
  0x42   :  { %355 = vmatprep.subr.bf16.mxu0 %v514_v0  ;;  %375 = vmatprep.subr.bf16.mxu1 %v514_v0 }
  0x45   :  { %356 = vmatpush3.bf16.msra.mxu0 %v400_v5  ;;  %376 = vmatpush3.bf16.msra.mxu1 %v408_v10 }
  0x46   :  { %357 = vmatprep.subr.bf16.mxu0 %v514_v0  ;;  %377 = vmatprep.subr.bf16.mxu1 %v514_v0 }
  0x49   :  { %358 = vmatpush3.bf16.msra.mxu0 %v401_v7  ;;  %378 = vmatpush3.bf16.msra.mxu1 %v409_v14 }
  0x4a   :  { %359 = vmatprep.subr.bf16.mxu0 %v514_v0  ;;  %379 = vmatprep.subr.bf16.mxu1 %v514_v0 }
  0x4d   :  { %360 = vmatpush3.bf16.msra.mxu0 %v402_v9  ;;  %380 = vmatpush3.bf16.msra.mxu1 %v410_v15 }
  0x4e   :  { %361 = vmatprep.subr.bf16.mxu0 %v514_v0  ;;  %381 = vmatprep.subr.bf16.mxu1 %v514_v0 }
  0x51   :  { %362 = vmatpush3.bf16.msra.mxu0 %v403_v11  ;;  %382 = vmatpush3.bf16.msra.mxu1 %v411_v16 }
  0x52   :  { %363 = vmatprep.subr.bf16.mxu0 %v514_v0  ;;  %383 = vmatprep.subr.bf16.mxu1 %v514_v0 }
  0x55   :  { %364 = vmatpush3.bf16.msra.mxu0 %v404_v12  ;;  %384 = vmatpush3.bf16.msra.mxu1 %v412_v17 }
  0x58   :  { %366 = vmatmul.mubr.bf16.vlgmr.msra.gmra.mrb[0].mxu0 %v57_v13 }
 0x12b   :  { %v156_v18 = vpop.f32.mrb[0].mxu0 }
 0x12c   :  { %413 = vtanh.f32 %v156_v18  ;;  %v367_v19 = vpop.f32.mrb[1].mxu0 }
 0x12d   :  { %v159_v21 = vpop.f32.mrb[2].mxu0 }
 0x12e   :  { %v368_v22 = vpop.f32.mrb[3].mxu0 }
 0x136   :  { %v414_v24 = vpop.eup %413 }
 0x137   :  { %v166_v25 = vsel %vm165_vm1, 1.0, %v414_v24 }
 0x138   :  { %v167_v26 = vpack.c.bf16 %v166_v25, %v166_v25 }
 0x13a   :  { %386 = vmatmul.mubr.bf16.vlgmr.msra.gmra.mrb[0].mxu1 %v167_v26 }
 0x20d   :  { %v266_v27 = vpop.f32.mrb[0].mxu1 }
 0x20e   :  { %272 = vst [vmem:[#allocation8] sm:$0xff] %v266_v27  ;;  %v387_v28 = vpop.f32.mrb[1].mxu1  ;;  %v274_v29 = vsel %vm273_vm2, %v266_v27, -inf }
 0x20f   :  { %275 = vmax.xlane.f32.xlu0 %v274_v29  ;;  %v269_v30 = vpop.f32.mrb[2].mxu1 }
 0x210   :  { %v388_v31 = vpop.f32.mrb[3].mxu1 }
 0x29c   :  { %v276_v32 = vpop.xlane.xlu0 %275 }
 0x29d   :  { %vm277_vm3 = vcmp.eq.f32.partialorder %v274_v29, %v276_v32 }
 0x29e   :  { %v278_v33 = vsel %vm277_vm3, %v164_v23, 128 }
 0x29f   :  { %v280_v34 = vshra.s32 %v278_v33, 16  ;;  %v279_v36 = vand.u32 65535, %v278_v33 }
 0x2a1   :  { %v282_v35 = vcvt.s32.f32 %v280_v34  ;;  %v281_v38 = vcvt.s32.f32 %v279_v36 }
 0x2a3   :  { %283 = vmin.xlane.f32.xlu0 %v282_v35 }
 0x330   :  { %v284_v37 = vpop.xlane.xlu0 %283 }
 0x331   :  { %vm285_vm4 = vcmp.eq.f32.partialorder %v282_v35, %v284_v37 }
 0x332   :  { %v286_v39 = vsel %vm285_vm4, %v281_v38, inf }
 0x333   :  { %287 = vmin.xlane.f32.xlu1 %v286_v39 }
 0x334   :  { %492 = shalt.err (!%p489_p0)
}
 0x335   :  { %s493_s29 = scalar_lea.hbm %s602_s3, 128 }
 0x336   :  { %p494_p1 = scmp.ne.s32.totalorder %s602_s3, %s493_s29  ;;  %p497_p2 = scmp.lt.u32.totalorder %s493_s29, %s602_s3 }
 0x338   :  { %p499_p3 = pnand %p497_p2, %p494_p1 }
 0x33a   :  { %502 = shalt.err (!%p499_p3)
}
 0x33b   :  { %304 = dma.vmem_to_hbm [thread:$0]  %s302_s25, 128, %s602_s3, [#allocation4]   ;;  %v290_v40 = vcvt.f32.s32 %v284_v37  ;;  %vm293_vm5 = vcmask 7168  }
 0x33d   :  { %v291_v42 = vshll.u32 %v290_v40, 16 }
 0x3c0   :  { %v288_v41 = vpop.xlane.xlu1 %287 }
 0x3c1   :  { %v289_v43 = vcvt.f32.s32 %v288_v41 }
 0x3c3   :  { %v292_v44 = vadd.s32 %v291_v42, %v289_v43 }
 0x3c5   :  { %294 = vst.msk [vmem:[%s603_s4] sm:$0xff] %vm293_vm5, %v292_v44 }
 0x3c6   :  { %507 = dma.done.wait [#allocation4], 128  }
 0x3c7   :  { %508 = vsyncadd [#allocation4], 4294967168 }
 0x3c8   :  { %312 = vsyncpa [#allocation3], 1 }
 0x3c9   :  { %313 = vsyncpa [#allocation6], 1 }
 0x3ca   :  { %314 = vsyncpa [#allocation4], 1 }

</bundles_post_ra>
